<compile_context>
chip_gen: v7x
topology: tpu7x:2x2x1
jax: 0.10.0
libtpu: 0.0.40
codegen_flags: <defaults>
</compile_context>

<pallas_src>
import functools

import jax
import jax.numpy as jnp
from jax.experimental import pallas as pl
from jax.experimental.pallas import tpu as pltpu

EPS = 1e-8  # PyTorch F.cosine_similarity default eps


def _cosine_loss_kernel(x_ref, y_ref, o_ref, acc_ref, *, n_rows, tile_rows):
    """One batch tile per grid step; running sum of cosines lives in SMEM."""
    i = pl.program_id(0)

    @pl.when(i == 0)
    def _():
        acc_ref[0] = jnp.float32(0.0)

    x = x_ref[...].astype(jnp.float32)
    y = y_ref[...].astype(jnp.float32)

    dot = jnp.sum(x * y, axis=1, keepdims=True)    # [TB, 1]
    nx2 = jnp.sum(x * x, axis=1, keepdims=True)    # [TB, 1]
    ny2 = jnp.sum(y * y, axis=1, keepdims=True)    # [TB, 1]

    # ATen formulation: clamp the product of squared norms at eps^2, then
    # rsqrt (EUP) instead of two sqrts + a VALU divide.
    cos = dot * jax.lax.rsqrt(jnp.maximum(nx2 * ny2, jnp.float32(EPS * EPS)))

    # Mask rows that fall past the real batch size (padded final tile).
    row = i * tile_rows + jax.lax.broadcasted_iota(jnp.int32, cos.shape, 0)
    cos = jnp.where(row < n_rows, cos, 0.0)

    acc_ref[0] += jnp.sum(cos)

    @pl.when(i == pl.num_programs(0) - 1)
    def _():
        o_ref[0, 0] = jnp.float32(1.0) - acc_ref[0] / jnp.float32(n_rows)


def _pick_tile_rows(B: int, D: int, itemsize: int) -> int:
    # 4-buffer pipeline footprint target (~8 MiB): comfortably inside the
    # default scoped VMEM limit on v5e/v6e/v7x while still large enough to
    # sit near the HBM roofline per the tile-size sweep.
    budget_bytes = 8 * 1024 * 1024
    row_align = 16 if itemsize < 4 else 8
    tb = budget_bytes // (4 * D * itemsize)
    tb = max(row_align, (tb // row_align) * row_align)
    return tb


def cosine_loss(features_ori: jax.Array, features_aug: jax.Array,
                *, tile_rows: int | None = None) -> jax.Array:
    """loss = 1 - mean_b cos_sim(features_ori[b], features_aug[b])."""
    assert features_ori.shape == features_aug.shape
    assert features_ori.ndim == 2, "expected [B, D] features"

    B, D = features_ori.shape
    itemsize = jnp.dtype(features_ori.dtype).itemsize
    row_align = 16 if itemsize < 4 else 8

    if tile_rows is None:
        tile_rows = _pick_tile_rows(B, D, itemsize)
    if tile_rows >= B:
        tile_rows = B                      # single tile: full-dim block is legal
    else:
        tile_rows = max(row_align, (tile_rows // row_align) * row_align)

    grid = (pl.cdiv(B, tile_rows),)
    kernel = functools.partial(_cosine_loss_kernel, n_rows=B, tile_rows=tile_rows)

    out = pl.pallas_call(
        kernel,
        out_shape=jax.ShapeDtypeStruct((1, 1), jnp.float32),
        grid_spec=pltpu.PrefetchScalarGridSpec(
            num_scalar_prefetch=0,
            grid=grid,
            in_specs=[
                pl.BlockSpec((tile_rows, D), lambda i: (i, 0)),
                pl.BlockSpec((tile_rows, D), lambda i: (i, 0)),
            ],
            out_specs=pl.BlockSpec((1, 1), lambda i: (0, 0),
                                   memory_space=pltpu.SMEM),
            scratch_shapes=[pltpu.SMEM((1,), jnp.float32)],
        ),
        compiler_params=pltpu.CompilerParams(
            dimension_semantics=("arbitrary",),   # accumulating axis
        ),
        cost_estimate=pl.CostEstimate(
            flops=6 * B * D,
            transcendentals=B,
            bytes_accessed=2 * B * D * itemsize + 4,
        ),
    )(features_ori, features_aug)
    return out[0, 0]


def _ref_loss(x, y):
    # Pure-JAX mirror of PyTorch F.cosine_similarity(...).mean() (ATen math).
    x32 = x.astype(jnp.float32)
    y32 = y.astype(jnp.float32)
    dot = jnp.sum(x32 * y32, axis=1)
    n2 = jnp.sum(x32 * x32, axis=1) * jnp.sum(y32 * y32, axis=1)
    return 1.0 - jnp.mean(dot * jax.lax.rsqrt(jnp.maximum(n2, EPS * EPS)))


if __name__ == "__main__":
    key = jax.random.PRNGKey(0)
    k1, k2, k3, k4 = jax.random.split(key, 4)

    # Case 1: small features, single tile (block == full array).
    B, D = 8, 32
    features_ori = jax.random.normal(k1, (B, D), dtype=jnp.float32)
    features_aug = jax.random.normal(k2, (B, D), dtype=jnp.float32)
    loss = cosine_loss(features_ori, features_aug)
    jax.block_until_ready(loss)
    ref = _ref_loss(features_ori, features_aug)
    assert jnp.allclose(loss, ref, atol=1e-5, rtol=1e-5), (loss, ref)

    # Case 2: multi-tile grid with a padded final tile (B not a tile multiple),
    # exercising the accumulator init/finalize and the row mask.
    B2, D2 = 20, 128
    x2 = jax.random.normal(k3, (B2, D2), dtype=jnp.float32)
    y2 = jax.random.normal(k4, (B2, D2), dtype=jnp.float32)
    loss2 = cosine_loss(x2, y2, tile_rows=8)
    jax.block_until_ready(loss2)
    ref2 = _ref_loss(x2, y2)
    assert jnp.allclose(loss2, ref2, atol=1e-5, rtol=1e-5), (loss2, ref2)

    print("KERNEL_OK")
</pallas_src>

<mosaic_0001>
module attributes {stable_mosaic.version = 11 : i64} {
  func.func @_cosine_loss_kernel(%arg0: i32, %arg1: memref<8x32xf32, #tpu.memory_space<vmem>>, %arg2: memref<8x32xf32, #tpu.memory_space<vmem>>, %arg3: memref<1x1xf32, #tpu.memory_space<smem>>, %arg4: memref<1xf32, #tpu.memory_space<smem>>) attributes {dimension_semantics = [#tpu.dimension_semantics<arbitrary>], iteration_bounds = array<i64: 1>, scalar_prefetch = 0 : i64, scratch_operands = 1 : i64, tpu.core_type = #tpu.core_type<tc>, window_params = [{transform_indices = @transform_0, window_bounds = array<i64: 8, 32>}, {transform_indices = @transform_1, window_bounds = array<i64: 8, 32>}, {transform_indices = @transform_2, window_bounds = array<i64: 1, 1>}]} {
    %c0_i32 = arith.constant 0 : i32
    %0 = arith.cmpi eq, %arg0, %c0_i32 : i32
    %1 = arith.extui %0 : i1 to i32
    %c0_i32_0 = arith.constant 0 : i32
    %2 = arith.cmpi ne, %1, %c0_i32_0 : i32
    scf.if %2 {
      %cst_14 = arith.constant 0.000000e+00 : f32
      %c0_15 = arith.constant 0 : index
      %37 = memref.load %arg4[%c0_15] : memref<1xf32, #tpu.memory_space<smem>>
      memref.store %cst_14, %arg4[%c0_15] : memref<1xf32, #tpu.memory_space<smem>>
    } else {
    }
    %c0 = arith.constant 0 : index
    %c0_1 = arith.constant 0 : index
    %3 = vector.load %arg1[%c0, %c0_1] : memref<8x32xf32, #tpu.memory_space<vmem>>, vector<8x32xf32>
    %c0_2 = arith.constant 0 : index
    %c0_3 = arith.constant 0 : index
    %4 = vector.load %arg2[%c0_2, %c0_3] : memref<8x32xf32, #tpu.memory_space<vmem>>, vector<8x32xf32>
    %5 = arith.mulf %3, %4 : vector<8x32xf32>
    %cst = arith.constant dense<0.000000e+00> : vector<8xf32>
    %6 = vector.multi_reduction <add>, %5, %cst [1] : vector<8x32xf32> to vector<8xf32>
    %7 = vector.shape_cast %6 : vector<8xf32> to vector<8x1xf32>
    %8 = arith.mulf %3, %3 : vector<8x32xf32>
    %cst_4 = arith.constant dense<0.000000e+00> : vector<8xf32>
    %9 = vector.multi_reduction <add>, %8, %cst_4 [1] : vector<8x32xf32> to vector<8xf32>
    %10 = vector.shape_cast %9 : vector<8xf32> to vector<8x1xf32>
    %11 = arith.mulf %4, %4 : vector<8x32xf32>
    %cst_5 = arith.constant dense<0.000000e+00> : vector<8xf32>
    %12 = vector.multi_reduction <add>, %11, %cst_5 [1] : vector<8x32xf32> to vector<8xf32>
    %13 = vector.shape_cast %12 : vector<8xf32> to vector<8x1xf32>
    %14 = arith.mulf %10, %13 : vector<8x1xf32>
    %cst_6 = arith.constant 1.000000e-16 : f32
    %15 = vector.broadcast %cst_6 : f32 to vector<8x1xf32>
    %16 = arith.maximumf %14, %15 : vector<8x1xf32>
    %17 = math.rsqrt %16 : vector<8x1xf32>
    %18 = arith.mulf %7, %17 : vector<8x1xf32>
    %c8_i32 = arith.constant 8 : i32
    %19 = arith.muli %arg0, %c8_i32 : i32
    %20 = tpu.iota {dimensions = array<i32: 0>} : vector<8x1xi32>
    %21 = vector.broadcast %19 : i32 to vector<8x1xi32>
    %22 = arith.addi %21, %20 : vector<8x1xi32>
    %c8_i32_7 = arith.constant 8 : i32
    %23 = vector.broadcast %c8_i32_7 : i32 to vector<8x1xi32>
    %24 = arith.cmpi slt, %22, %23 : vector<8x1xi32>
    %cst_8 = arith.constant 0.000000e+00 : f32
    %25 = vector.broadcast %cst_8 : f32 to vector<8x1xf32>
    %26 = arith.select %24, %18, %25 : vector<8x1xi1>, vector<8x1xf32>
    %c0_9 = arith.constant 0 : index
    %27 = memref.load %arg4[%c0_9] : memref<1xf32, #tpu.memory_space<smem>>
    %28 = vector.shape_cast %26 : vector<8x1xf32> to vector<1x8x1xf32>
    %cst_10 = arith.constant dense<0.000000e+00> : vector<1xf32>
    %29 = vector.multi_reduction <add>, %28, %cst_10 [1, 2] : vector<1x8x1xf32> to vector<1xf32>
    %30 = vector.shape_cast %29 : vector<1xf32> to vector<1x1x1xf32>
    %31 = vector.extract %30[0, 0, 0] : f32 from vector<1x1x1xf32>
    %32 = arith.addf %27, %31 : f32
    %c0_11 = arith.constant 0 : index
    %33 = memref.load %arg4[%c0_11] : memref<1xf32, #tpu.memory_space<smem>>
    memref.store %32, %arg4[%c0_11] : memref<1xf32, #tpu.memory_space<smem>>
    %c0_i32_12 = arith.constant 0 : i32
    %34 = arith.cmpi eq, %arg0, %c0_i32_12 : i32
    %35 = arith.extui %34 : i1 to i32
    %c0_i32_13 = arith.constant 0 : i32
    %36 = arith.cmpi ne, %35, %c0_i32_13 : i32
    scf.if %36 {
      %c0_14 = arith.constant 0 : index
      %37 = memref.load %arg4[%c0_14] : memref<1xf32, #tpu.memory_space<smem>>
      %cst_15 = arith.constant 8.000000e+00 : f32
      %38 = arith.divf %37, %cst_15 : f32
      %cst_16 = arith.constant 1.000000e+00 : f32
      %39 = arith.subf %cst_16, %38 : f32
      %c0_17 = arith.constant 0 : index
      %c0_18 = arith.constant 0 : index
      %40 = memref.load %arg3[%c0_17, %c0_18] : memref<1x1xf32, #tpu.memory_space<smem>>
      memref.store %39, %arg3[%c0_17, %c0_18] : memref<1x1xf32, #tpu.memory_space<smem>>
    } else {
    }
    return
  }
  func.func @transform_0(%arg0: i32) -> (i32, i32) {
    %c0_i32 = arith.constant 0 : i32
    %c0_i32_0 = arith.constant 0 : i32
    return %arg0, %c0_i32 : i32, i32
  }
  func.func @transform_1(%arg0: i32) -> (i32, i32) {
    %c0_i32 = arith.constant 0 : i32
    %c0_i32_0 = arith.constant 0 : i32
    return %arg0, %c0_i32 : i32, i32
  }
  func.func @transform_2(%arg0: i32) -> (i32, i32) {
    %c0_i32 = arith.constant 0 : i32
    %c0_i32_0 = arith.constant 0 : i32
    %c0_i32_1 = arith.constant 0 : i32
    return %c0_i32, %c0_i32_0 : i32, i32
  }
}

</mosaic_0001>

<bundles_post_ra>
// kernel: tpu_custom_call.1
= control target key start
LH: loop header
LB: loop body
LE: loop exit
PB: predicated region body
PF: predicated region fallthrough
CT: control target
= control target key end

     0   :  { %7 = vsyncpa [#allocation4], 0  ;;  %s229_s0 = inlined_call_operand.hbm [shape: f32[8,32], index: 0, kind: input, shape index: {}]   ;;  %s230_s1 = inlined_call_operand.hbm [shape: f32[8,32], index: 1, kind: input, shape index: {}]   ;;  %s231_s2 = inlined_call_operand.hbm [shape: f32[1,1], index: 2, kind: output, shape index: {}]  }
   0x1   :  { %8 = vsyncpa [#allocation7], 0 }
   0x2   :  { %9 = vsyncpa [#allocation5], 0  ;;  %s175_s9 = smov [#allocation3]   ;;  %s176_s11 = smov [#allocation6]  }
   0x3   :  { %s16_s10 = sshll.u32 %s175_s9, 4  ;;  %s26_s12 = sshll.u32 %s176_s11, 4  ;;  %s17_s10 = int_to_ptr.vmem [resolvable:$true] %s16_s10  ;;  %s27_s12 = int_to_ptr.vmem [resolvable:$true] %s26_s12 }
   0x4   :  { %s115_s15 = scalar_lea.hbm %s229_s0, 128 }
   0x5   :  { %p116_p0 = scmp.ne.s32.totalorder %s229_s0, %s115_s15  ;;  %p119_p1 = scmp.lt.u32.totalorder %s115_s15, %s229_s0 }
   0x7   :  { %p121_p2 = pnand %p119_p1, %p116_p0 }
   0x9   :  { %124 = shalt.err (!%p121_p2)
}
   0xa   :  { %s125_s20 = scalar_lea.vmem %s17_s10, 128  ;;  %p130_p4 = scmp.lt.s32.totalorder %s17_s10, %s17_s10 }
   0xb   :  { %p126_p3 = scmp.ne.s32.totalorder %s17_s10, %s125_s20  ;;  %p131_p5 = scmp.lt.s32.totalorder %s125_s20, %s125_s20 }
   0xd   :  { %p132_p6 = por %p131_p5, %p130_p4 }
   0xf   :  { %p133_p7 = pnand %p132_p6, %p126_p3 }
  0x11   :  { %136 = shalt.err (!%p133_p7)
}
  0x12   :  { %19 = dma.hbm_to_vmem [thread:$0]  %s229_s0, 128, %s17_s10, [#allocation4]  }
  0x13   :  { %s137_s25 = scalar_lea.hbm %s230_s1, 128 }
  0x14   :  { %p138_p8 = scmp.ne.s32.totalorder %s230_s1, %s137_s25  ;;  %p141_p9 = scmp.lt.u32.totalorder %s137_s25, %s230_s1 }
  0x16   :  { %p143_p10 = pnand %p141_p9, %p138_p8 }
  0x18   :  { %146 = shalt.err (!%p143_p10)
}
  0x19   :  { %s147_s30 = scalar_lea.vmem %s27_s12, 128  ;;  %p152_p12 = scmp.lt.s32.totalorder %s27_s12, %s27_s12 }
  0x1a   :  { %p148_p11 = scmp.ne.s32.totalorder %s27_s12, %s147_s30  ;;  %p153_p13 = scmp.lt.s32.totalorder %s147_s30, %s147_s30 }
  0x1c   :  { %p154_p0 = por %p153_p13, %p152_p12 }
  0x1e   :  { %p155_p1 = pnand %p154_p0, %p148_p11 }
  0x20   :  { %158 = shalt.err (!%p155_p1)
}
  0x21   :  { %29 = dma.hbm_to_vmem [thread:$0]  %s230_s1, 128, %s27_s12, [#allocation7]  }
  0x22   :  { %169 = dma.done.wait [#allocation4], 128  }
  0x23   :  { %170 = vsyncadd [#allocation4], 4294967168 }
  0x24   :  { %171 = dma.done.wait [#allocation7], 128  }
  0x25   :  { %172 = vsyncadd [#allocation7], 4294967168  ;;  %v42_v0 = vld [vmem:[#allocation3] sm:$0xff]  ;;  %vm45_vm0 = vcmask 261120   ;;  %v43_v1 = vld [vmem:[#allocation6] sm:$0xff]  ;;  %vm69_vm1 = vcmask 7168  }
  0x26   :  { %v49_v2 = vmul.f32 %v42_v0, %v42_v0  ;;  %v53_v3 = vmul.f32 %v43_v1, %v43_v1  ;;  %v44_v4 = vmul.f32 %v43_v1, %v42_v0  ;;  %s159_s8 = scalar_lea.hbm %s231_s2, 16 }
  0x27   :  { %p160_p2 = scmp.ne.s32.totalorder %s231_s2, %s159_s8  ;;  %p163_p3 = scmp.lt.u32.totalorder %s159_s8, %s231_s2 }
  0x28   :  { %v50_v5 = vsel %vm45_vm0, %v49_v2, 0.0  ;;  %v46_v6 = vsel %vm45_vm0, %v44_v4, 0.0  ;;  %v54_v7 = vsel %vm45_vm0, %v53_v3, 0.0 }
  0x29   :  { %51 = vadd.xlane.f32.xlu0 %v50_v5  ;;  %47 = vadd.xlane.f32.xlu1 %v46_v6  ;;  %p165_p4 = pnand %p163_p3, %p160_p2 }
  0x2d   :  { %55 = vadd.xlane.f32.xlu0 %v54_v7 }
  0xb6   :  { %v52_v8 = vpop.xlane.xlu0 %51  ;;  %v48_v12 = vpop.xlane.xlu1 %47 }
  0xba   :  { %v56_v9 = vpop.xlane.xlu0 %55 }
  0xbb   :  { %v57_v10 = vmul.f32 %v56_v9, %v52_v8 }
  0xbd   :  { %v58_v11 = vmax.f32 %v57_v10, 1e-16 }
  0xbf   :  { %113 = vrsqrt.f32 %v58_v11 }
  0xc9   :  { %v114_v13 = vpop.eup %113 }
  0xca   :  { %v60_v14 = vmul.f32 %v114_v13, %v48_v12 }
  0xcc   :  { %v70_v15 = vsel %vm69_vm1, %v60_v14, 0.0 }
  0xcd   :  { %71 = vadd.xlane.f32.xlu1 %v70_v15 }
 0x15a   :  { %v72_v16 = vpop.xlane.xlu1 %71 }
 0x15b   :  { %v73_v17 = vrot.slane %v72_v16, 4 }
 0x15d   :  { %v74_v18 = vadd.f32 %v73_v17, %v72_v16 }
 0x15f   :  { %v75_v19 = vrot.slane %v74_v18, 2 }
 0x161   :  { %v76_v20 = vadd.f32 %v75_v19, %v74_v18 }
 0x163   :  { %v77_v21 = vrot.slane %v76_v20, 1 }
 0x165   :  { %v78_v22 = vadd.f32 %v77_v21, %v76_v20 }
 0x167   :  { %108 = vpush %v78_v22 }
 0x198   :  { %s109_s1 = spop %108 }
 0x199   :  { %s89_s4 = smul.f32 0.125, %s109_s1 }
 0x19b   :  { %s90_s5 = ssub.f32 1.0, %s89_s4 }
 0x19d   :  { %92 = sst [smem:[#allocation8]] %s90_s5 }
 0x19e   :  { %168 = shalt.err (!%p165_p4)
}
 0x19f   :  { %s177_s13 = smov [#allocation8]  }
 0x1a0   :  { %100 = dma.smem_to_hbm %s177_s13, 16, %s231_s2, [#allocation5]  }
 0x1a1   :  { %173 = dma.done.wait [#allocation5], 16  }
 0x1a2   :  { %174 = vsyncadd [#allocation5], 4294967280 }
 0x1a3   :  { %104 = sfence }
 0x1a4   :  { %105 = vsyncpa [#allocation4], 1 }
 0x1a5   :  { %106 = vsyncpa [#allocation7], 1 }
 0x1a6   :  { %107 = vsyncpa [#allocation5], 1 }

</bundles_post_ra>
